<compile_context>
chip_gen: v5e
topology: v5e:2x2
jax: 0.10.0
libtpu: 0.0.40
codegen_flags: <defaults>
</compile_context>

<pallas_src>
import functools

import jax
import jax.numpy as jnp
from jax.experimental import pallas as pl
from jax.experimental.pallas import tpu as pltpu


# ---------------------------------------------------------------------------
# Small helpers
# ---------------------------------------------------------------------------
def _round_up(x, m):
    return ((x + m - 1) // m) * m


def _pad2(a, rows, cols):
    return jnp.pad(a, ((0, rows - a.shape[0]), (0, cols - a.shape[1])))


def _vmem_capacity_bytes():
    try:
        info_fn = getattr(pltpu, "get_tpu_info", None)
        if info_fn is not None:
            cap = getattr(info_fn(), "vmem_capacity_bytes", None)
            if cap:
                return int(cap)
    except Exception:
        pass
    return 64 * 1024 * 1024  # conservative default (v7x per-TensorCore VMEM)


# ---------------------------------------------------------------------------
# Pallas kernels
# ---------------------------------------------------------------------------
def _transform_kernel(x_ref, w_ref, o_ref):
    # XW = X_panel @ W (bf16 operands, f32 MXU accumulate, bf16 output).
    o_ref[...] = jnp.dot(
        x_ref[...], w_ref[...], preferred_element_type=jnp.float32
    ).astype(o_ref.dtype)


def _propagate_kernel(a_ref, xw_ref, b_ref, o_ref, *, apply_relu):
    # Full-K row panel: out = [relu](A_panel @ XW + b).  XW is VMEM-resident.
    out = jnp.dot(a_ref[...], xw_ref[...], preferred_element_type=jnp.float32)
    out = out + b_ref[...]
    if apply_relu:
        out = jnp.maximum(out, 0.0)
    o_ref[...] = out.astype(o_ref.dtype)


def _propagate_fused_kernel(a_ref, xw_ref, b_ref, w2_ref, o_ref):
    # Layer-1 propagate + layer-2 feature transform fused:
    #   HW2_panel = relu(A_panel @ XW1 + b1) @ W2
    h = jnp.dot(a_ref[...], xw_ref[...], preferred_element_type=jnp.float32)
    h = jnp.maximum(h + b_ref[...], 0.0).astype(jnp.bfloat16)
    o_ref[...] = jnp.dot(
        h, w2_ref[...], preferred_element_type=jnp.float32
    ).astype(o_ref.dtype)


def _propagate_ksplit_kernel(a_ref, xw_ref, b_ref, o_ref, acc_ref, *, apply_relu):
    # Fallback for huge N: K-tiled reduction with f32 accumulator scratch.
    k = pl.program_id(1)

    @pl.when(k == 0)
    def _():
        acc_ref[...] = jnp.zeros_like(acc_ref)

    acc_ref[...] += jnp.dot(
        a_ref[...], xw_ref[...], preferred_element_type=jnp.float32
    )

    @pl.when(k == pl.num_programs(1) - 1)
    def _():
        out = acc_ref[...] + b_ref[...]
        if apply_relu:
            out = jnp.maximum(out, 0.0)
        o_ref[...] = out.astype(o_ref.dtype)


def _propagate_ksplit_fused_kernel(a_ref, xw_ref, b_ref, w2_ref, o_ref, acc_ref):
    k = pl.program_id(1)

    @pl.when(k == 0)
    def _():
        acc_ref[...] = jnp.zeros_like(acc_ref)

    acc_ref[...] += jnp.dot(
        a_ref[...], xw_ref[...], preferred_element_type=jnp.float32
    )

    @pl.when(k == pl.num_programs(1) - 1)
    def _():
        h = jnp.maximum(acc_ref[...] + b_ref[...], 0.0).astype(jnp.bfloat16)
        o_ref[...] = jnp.dot(
            h, w2_ref[...], preferred_element_type=jnp.float32
        ).astype(o_ref.dtype)


def _decoder_kernel(zs_ref, zd_ref, o_ref):
    # InnerProductDecoder: score[e] = sum_f zs[e, f] * zd[e, f].
    o_ref[...] = jnp.sum(zs_ref[...] * zd_ref[...], axis=-1, keepdims=True)


# ---------------------------------------------------------------------------
# pallas_call wrappers
# ---------------------------------------------------------------------------
def feature_transform(x_p, w_p, tile, vmem_limit):
    n_pad, in_p = x_p.shape
    f_p = w_p.shape[1]
    return pl.pallas_call(
        _transform_kernel,
        out_shape=jax.ShapeDtypeStruct((n_pad, f_p), jnp.bfloat16),
        grid_spec=pltpu.PrefetchScalarGridSpec(
            num_scalar_prefetch=0,
            grid=(n_pad // tile,),
            in_specs=[
                pl.BlockSpec((tile, in_p), lambda i: (i, 0)),
                pl.BlockSpec((in_p, f_p), lambda i: (0, 0)),   # W resident
            ],
            out_specs=pl.BlockSpec((tile, f_p), lambda i: (i, 0)),
        ),
        compiler_params=pltpu.CompilerParams(
            dimension_semantics=("parallel",),
            vmem_limit_bytes=vmem_limit,
        ),
    )(x_p, w_p)


def gcn_propagate(a_p, xw_p, b_p, w2_p, *, apply_relu, out_dtype, tm, tk,
                  vmem_limit):
    """out = [relu](A_hat @ XW + b) [ @ W2 if w2_p is given ]."""
    n_pad = a_p.shape[0]
    f_in = xw_p.shape[1]
    f_out = w2_p.shape[1] if w2_p is not None else f_in
    fused = w2_p is not None
    mt, kt = n_pad // tm, n_pad // tk

    if kt == 1:
        # Preferred path: 1-D grid over row panels, full K in one dot.
        in_specs = [
            pl.BlockSpec((tm, n_pad), lambda i: (i, 0)),      # A row panel
            pl.BlockSpec((n_pad, f_in), lambda i: (0, 0)),    # XW (resident)
            pl.BlockSpec((1, f_in), lambda i: (0, 0)),        # bias (resident)
        ]
        args = [a_p, xw_p, b_p]
        if fused:
            in_specs.append(pl.BlockSpec((f_in, f_out), lambda i: (0, 0)))
            args.append(w2_p)
            kernel = _propagate_fused_kernel
        else:
            kernel = functools.partial(_propagate_kernel, apply_relu=apply_relu)
        return pl.pallas_call(
            kernel,
            out_shape=jax.ShapeDtypeStruct((n_pad, f_out), out_dtype),
            grid_spec=pltpu.PrefetchScalarGridSpec(
                num_scalar_prefetch=0,
                grid=(mt,),
                in_specs=in_specs,
                out_specs=pl.BlockSpec((tm, f_out), lambda i: (i, 0)),
            ),
            compiler_params=pltpu.CompilerParams(
                dimension_semantics=("parallel",),
                vmem_limit_bytes=vmem_limit,
            ),
        )(*args)

    # Fallback for graphs too large for a full row panel: big (TM, TK) tiles.
    in_specs = [
        pl.BlockSpec((tm, tk), lambda i, k: (i, k)),
        pl.BlockSpec((tk, f_in), lambda i, k: (k, 0)),
        pl.BlockSpec((1, f_in), lambda i, k: (0, 0)),
    ]
    args = [a_p, xw_p, b_p]
    if fused:
        in_specs.append(pl.BlockSpec((f_in, f_out), lambda i, k: (0, 0)))
        args.append(w2_p)
        kernel = _propagate_ksplit_fused_kernel
    else:
        kernel = functools.partial(_propagate_ksplit_kernel, apply_relu=apply_relu)
    return pl.pallas_call(
        kernel,
        out_shape=jax.ShapeDtypeStruct((n_pad, f_out), out_dtype),
        grid_spec=pltpu.PrefetchScalarGridSpec(
            num_scalar_prefetch=0,
            grid=(mt, kt),
            in_specs=in_specs,
            out_specs=pl.BlockSpec((tm, f_out), lambda i, k: (i, 0)),
            scratch_shapes=[pltpu.VMEM((tm, f_in), jnp.float32)],
        ),
        compiler_params=pltpu.CompilerParams(
            dimension_semantics=("parallel", "arbitrary"),
            vmem_limit_bytes=vmem_limit,
        ),
    )(*args)


def inner_product_decode(zs, zd, tile_e, vmem_limit):
    e_pad, f_p = zs.shape
    return pl.pallas_call(
        _decoder_kernel,
        out_shape=jax.ShapeDtypeStruct((e_pad, 1), jnp.float32),
        grid_spec=pltpu.PrefetchScalarGridSpec(
            num_scalar_prefetch=0,
            grid=(e_pad // tile_e,),
            in_specs=[
                pl.BlockSpec((tile_e, f_p), lambda i: (i, 0)),
                pl.BlockSpec((tile_e, f_p), lambda i: (i, 0)),
            ],
            out_specs=pl.BlockSpec((tile_e, 1), lambda i: (i, 0)),
        ),
        compiler_params=pltpu.CompilerParams(
            dimension_semantics=("parallel",),
            vmem_limit_bytes=vmem_limit,
        ),
    )(zs, zd)


# ---------------------------------------------------------------------------
# Generation-aware tiling plan
# ---------------------------------------------------------------------------
def _make_plan(n, in_p, hid_p, out_p):
    cap = _vmem_capacity_bytes()
    vmem_limit = int(cap * 0.75)          # ~48 MiB on v7x, ~96 MiB on v5e/v6e
    budget = int(cap * 0.70)
    f_max = max(hid_p, out_p)
    n_pad_min = _round_up(n, 128)

    tm = n_pad = tk = None
    for t in (1024, 512, 256, 128):
        if t > n_pad_min:
            continue
        npad = _round_up(n, t)
        resident = npad * f_max * 2 + hid_p * out_p * 2 + 2 * f_max * 4
        need = resident + 2 * t * npad * 2 + 2 * t * f_max * 4
        if need <= budget:
            tm, n_pad, tk = t, npad, npad
            break
    if tm is None:
        # Huge graph: keep a K grid axis with large panels instead of tiny TM.
        tm, tk = 256, 4096
        n_pad = _round_up(n, tk)

    # Megacore (v7x): prefer >= 2 row panels so both TensorCores get work.
    while tm > 128 and n_pad // tm < 2:
        tm //= 2

    # Feature-transform row tile (amortizes ~0.35 us/step overhead).
    tm_ft = max(t for t in (1024, 512, 256, 128) if t <= n_pad and n_pad % t == 0)
    while tm_ft > 128 and (
        2 * tm_ft * in_p * 2 + in_p * hid_p * 2 + 2 * tm_ft * hid_p * 2 > budget
    ):
        tm_ft //= 2

    return {"tm": tm, "tk": tk, "n_pad": n_pad, "tm_ft": tm_ft,
            "vmem_limit": vmem_limit}


# ---------------------------------------------------------------------------
# Plain-JAX glue (normalization, padding, endpoint gather)
# ---------------------------------------------------------------------------
def normalized_adjacency(edge_index, num_nodes, n_pad):
    # Dense PyG-style gcn_norm built directly at padded size:
    # scatter-add edge weights (A[dst, src] so A @ X aggregates src -> dst),
    # add self-loops only where missing, symmetric D^-1/2 (A + I) D^-1/2,
    # with the normalization and bf16 cast fused into one elementwise pass.
    # Padded rows/cols have degree 0 and stay exactly zero.
    src, dst = edge_index[0], edge_index[1]
    a = jnp.zeros((n_pad, n_pad), jnp.float32).at[dst, src].add(1.0)
    idx = jnp.arange(num_nodes)
    diag = a[idx, idx]
    a = a.at[idx, idx].add(jnp.where(diag > 0.0, 0.0, 1.0))
    deg = a.sum(axis=1)
    dinv = jnp.where(deg > 0.0, jax.lax.rsqrt(deg), 0.0)
    return (dinv[:, None] * a * dinv[None, :]).astype(jnp.bfloat16)


def link_gcn_forward(params, x, edge_index, edge_label_index, sigmoid=False):
    n, in_c = x.shape
    hid_c = params["w1"].shape[1]
    out_c = params["w2"].shape[1]
    in_p, hid_p, out_p = (_round_up(c, 128) for c in (in_c, hid_c, out_c))

    plan = _make_plan(n, in_p, hid_p, out_p)
    n_pad, vmem_limit = plan["n_pad"], plan["vmem_limit"]

    a_p = normalized_adjacency(edge_index, n, n_pad)   # dominant operand, bf16
    # TODO(synk): on v7x optionally cast a_p to float8_e4m3 to halve HBM
    # traffic of the N^2 operand (needs accuracy validation; not on v5e/v6e).
    x_p = _pad2(x, n_pad, in_p).astype(jnp.bfloat16)
    w1_p = _pad2(params["w1"], in_p, hid_p).astype(jnp.bfloat16)
    w2_p = _pad2(params["w2"], hid_p, out_p).astype(jnp.bfloat16)
    b1_p = _pad2(params["b1"].reshape(1, -1), 1, hid_p).astype(jnp.float32)
    b2_p = _pad2(params["b2"].reshape(1, -1), 1, out_p).astype(jnp.float32)

    # XW1 = X @ W1 (row-tiled, bf16).
    xw1 = feature_transform(x_p, w1_p, plan["tm_ft"], vmem_limit)

    # Layer 1 propagate with layer-2 transform fused in the epilogue:
    #   HW2 = relu(A_hat @ XW1 + b1) @ W2
    hw2 = gcn_propagate(a_p, xw1, b1_p, w2_p, apply_relu=True,
                        out_dtype=jnp.bfloat16, tm=plan["tm"], tk=plan["tk"],
                        vmem_limit=vmem_limit)

    # Layer 2 propagate: Z = A_hat @ HW2 + b2  (f32 output).
    z = gcn_propagate(a_p, hw2, b2_p, None, apply_relu=False,
                      out_dtype=jnp.float32, tm=plan["tm"], tk=plan["tk"],
                      vmem_limit=vmem_limit)

    # InnerProductDecoder: endpoint gather is XLA glue (data-dependent rows);
    # padded feature columns of z are zero so they are inert in the sum.
    src_idx, dst_idx = edge_label_index[0], edge_label_index[1]
    e = src_idx.shape[0]
    if e > 2048:
        tile_e = 2048
        e_pad = _round_up(e, tile_e)
    else:
        tile_e = e_pad = _round_up(e, 8)
    zs = _pad2(z[src_idx], e_pad, out_p)
    zd = _pad2(z[dst_idx], e_pad, out_p)
    scores = inner_product_decode(zs, zd, tile_e, vmem_limit)[:e, 0]
    if sigmoid:  # module default: sigmoid=False
        scores = jax.nn.sigmoid(scores)
    return scores


# ---------------------------------------------------------------------------
# Pure-JAX reference mirroring the kernel numerics (bf16 operands, f32 acc)
# ---------------------------------------------------------------------------
def _reference_forward(params, x, edge_index, edge_label_index):
    bf16, f32 = jnp.bfloat16, jnp.float32
    n = x.shape[0]
    a = normalized_adjacency(edge_index, n, n)
    xw1 = jnp.dot(x.astype(bf16), params["w1"].astype(bf16),
                  preferred_element_type=f32).astype(bf16)
    h = jnp.maximum(
        jnp.dot(a, xw1, preferred_element_type=f32)
        + params["b1"].reshape(1, -1), 0.0
    ).astype(bf16)
    hw2 = jnp.dot(h, params["w2"].astype(bf16),
                  preferred_element_type=f32).astype(bf16)
    z = jnp.dot(a, hw2, preferred_element_type=f32) + params["b2"].reshape(1, -1)
    return jnp.sum(z[edge_label_index[0]] * z[edge_label_index[1]], axis=-1)


if __name__ == "__main__":
    key = jax.random.PRNGKey(0)
    N, IN_C, HID_C, OUT_C, E, E_LBL = 16, 8, 32, 16, 40, 8
    k1, k2, k3, k4, k5 = jax.random.split(key, 5)

    x = jax.random.normal(k1, (N, IN_C), jnp.float32)
    edge_index = jax.random.randint(k2, (2, E), 0, N, dtype=jnp.int32)
    edge_label_index = jax.random.randint(k3, (2, E_LBL), 0, N, dtype=jnp.int32)

    # GCNConv params: glorot-uniform weights, zero bias (PyG defaults).
    w1 = jax.random.uniform(k4, (IN_C, HID_C), jnp.float32, -1.0, 1.0) * jnp.sqrt(
        6.0 / (IN_C + HID_C))
    w2 = jax.random.uniform(k5, (HID_C, OUT_C), jnp.float32, -1.0, 1.0) * jnp.sqrt(
        6.0 / (HID_C + OUT_C))
    b1 = jnp.zeros((1, HID_C), jnp.float32)
    b2 = jnp.zeros((1, OUT_C), jnp.float32)
    params = {"w1": w1, "b1": b1, "w2": w2, "b2": b2}

    out = link_gcn_forward(params, x, edge_index, edge_label_index)
    jax.block_until_ready(out)

    ref = _reference_forward(params, x, edge_index, edge_label_index)
    assert out.shape == (E_LBL,)
    err = jnp.max(jnp.abs(out - ref))
    assert jnp.allclose(out, ref, atol=2e-3, rtol=2e-3), \
        f"mismatch vs. JAX reference (max abs err {err})"

    print("KERNEL_OK")
</pallas_src>

<mosaic_0001>
module attributes {stable_mosaic.version = 11 : i64} {
  func.func @_transform_kernel(%arg0: i32, %arg1: memref<128x128xbf16, #tpu.memory_space<vmem>>, %arg2: memref<128x128xbf16, #tpu.memory_space<vmem>>, %arg3: memref<128x128xbf16, #tpu.memory_space<vmem>>) attributes {dimension_semantics = [#tpu.dimension_semantics<parallel>], iteration_bounds = array<i64: 1>, scalar_prefetch = 0 : i64, scratch_operands = 0 : i64, tpu.core_type = #tpu.core_type<tc>, window_params = [{transform_indices = @transform_0, window_bounds = array<i64: 128, 128>}, {pipeline_mode = #tpu.pipeline_mode<synchronous>, transform_indices = @transform_1, window_bounds = array<i64: 128, 128>}, {transform_indices = @transform_2, window_bounds = array<i64: 128, 128>}]} {
    %c0 = arith.constant 0 : index
    %c0_0 = arith.constant 0 : index
    %0 = vector.load %arg1[%c0, %c0_0] : memref<128x128xbf16, #tpu.memory_space<vmem>>, vector<128x128xbf16>
    %c0_1 = arith.constant 0 : index
    %c0_2 = arith.constant 0 : index
    %1 = vector.load %arg2[%c0_1, %c0_2] : memref<128x128xbf16, #tpu.memory_space<vmem>>, vector<128x128xbf16>
    %cst = arith.constant dense<0.000000e+00> : vector<128x128xf32>
    %2 = tpu.matmul %0, %1, %cst {dimension_numbers = #tpu.dot_dimension_numbers<[1], [0], [0], [1], [0, 0, 1, 1], [], []>} : vector<128x128xbf16>, vector<128x128xbf16>, vector<128x128xf32> -> vector<128x128xf32>
    %3 = arith.truncf %2 : vector<128x128xf32> to vector<128x128xbf16>
    %c0_3 = arith.constant 0 : index
    %c0_4 = arith.constant 0 : index
    %4 = vector.load %arg3[%c0_3, %c0_4] : memref<128x128xbf16, #tpu.memory_space<vmem>>, vector<128x128xbf16>
    tpu.vector_store %arg3[%c0_3, %c0_4], %3 {strides = array<i32>} : memref<128x128xbf16, #tpu.memory_space<vmem>>, vector<128x128xbf16>,
    return
  }
  func.func @transform_0(%arg0: i32) -> (i32, i32) {
    %c0_i32 = arith.constant 0 : i32
    %c0_i32_0 = arith.constant 0 : i32
    return %arg0, %c0_i32 : i32, i32
  }
  func.func @transform_1(%arg0: i32) -> (i32, i32) {
    %c0_i32 = arith.constant 0 : i32
    %c0_i32_0 = arith.constant 0 : i32
    %c0_i32_1 = arith.constant 0 : i32
    return %c0_i32, %c0_i32_0 : i32, i32
  }
  func.func @transform_2(%arg0: i32) -> (i32, i32) {
    %c0_i32 = arith.constant 0 : i32
    %c0_i32_0 = arith.constant 0 : i32
    return %arg0, %c0_i32 : i32, i32
  }
}

</mosaic_0001>

<bundles_post_ra>
// kernel: tpu_custom_call.1
= control target key start
LH: loop header
LB: loop body
LE: loop exit
PB: predicated region body
PF: predicated region fallthrough
CT: control target
= control target key end

     0   :  { %7 = vsyncpa [#allocation3], 0  ;;  %s545_s0 = inlined_call_operand.hbm [shape: bf16[128,128], index: 0, kind: input, shape index: {}]   ;;  %s546_s1 = inlined_call_operand.hbm [shape: bf16[128,128], index: 1, kind: input, shape index: {}]   ;;  %s547_s2 = inlined_call_operand.hbm [shape: bf16[128,128], index: 2, kind: output, shape index: {}]  }
   0x1   :  { %8 = vsyncpa [#allocation6], 0 }
   0x2   :  { %9 = vsyncpa [#allocation4], 0  ;;  %s14_s11 = sshll.u32 %s545_s0, 4  ;;  %s507_s12 = smov [#allocation2]   ;;  %s15_s11 = int_to_ptr.hbm [resolvable:$true] %s14_s11 }
   0x3   :  { %s16_s13 = sshll.u32 %s507_s12, 4  ;;  %s27_s16 = sshll.u32 %s546_s1, 4  ;;  %s17_s13 = int_to_ptr.vmem [resolvable:$true] %s16_s13  ;;  %s28_s16 = int_to_ptr.hbm [resolvable:$true] %s27_s16 }
   0x4   :  { %s508_s17 = smov 64   ;;  %s509_s18 = smov 4  }
   0x5   :  { %22 = dma.hbm_to_vmem [thread:$0]  %s15_s11, 1024, %s17_s13, [#allocation3], %s508_s17, %s508_s17, %s509_s18  }
   0x6   :  { %s510_s19 = smov [#allocation5]  }
   0x7   :  { %s29_s20 = sshll.u32 %s510_s19, 4  ;;  %s30_s20 = int_to_ptr.vmem [resolvable:$true] %s29_s20 }
   0x8   :  { %35 = dma.hbm_to_vmem [thread:$0]  %s28_s16, 1024, %s30_s20, [#allocation6], %s508_s17, %s508_s17, %s509_s18  }
   0x9   :  { %501 = dma.done.wait [#allocation3], 1024  }
   0xa   :  { %502 = vsyncadd [#allocation3], 4294966272 }
   0xb   :  { %503 = dma.done.wait [#allocation6], 1024  }
   0xc   :  { %504 = vsyncadd [#allocation6], 4294966272  ;;  %v352_v0 = vld [vmem:[#allocation5 + $0x38] sm:$0xff]  ;;  %v351_v1 = vld [vmem:[#allocation5 + $0x30] sm:$0xff]  ;;  %s511_s0 = smov [#allocation7]   ;;  %s259_s23 = sshll.u32 %s547_s2, 4  ;;  %s260_s23 = int_to_ptr.hbm [resolvable:$true] %s259_s23 }
   0xd   :  { %172 = vmatpush.bf16.msra.mxu0 %v352_v0  ;;  %400 = vmatpush.bf16.msra.mxu1 %v352_v0  ;;  %v350_v2 = vld [vmem:[#allocation5 + $0x28] sm:$0xff]  ;;  %v349_v3 = vld [vmem:[#allocation5 + $0x20] sm:$0xff]  ;;  %v348_v4 = vld [vmem:[#allocation5 + $0x18] sm:$0xff]  ;;  %s257_s1 = sshll.u32 %s511_s0, 4  ;;  %s258_s1 = int_to_ptr.vmem [resolvable:$true] %s257_s1 }
   0xe   :  { %401 = vmatpush.bf16.msra.mxu2 %v352_v0  ;;  %402 = vmatpush.bf16.msra.mxu3 %v352_v0  ;;  %v347_v5 = vld [vmem:[#allocation5 + $0x10] sm:$0xff]  ;;  %v346_v6 = vld [vmem:[#allocation5 + $0x8] sm:$0xff]  ;;  %v345_v7 = vld [vmem:[#allocation5] sm:$0xff] }
   0xf   :  { %v337_v8 = vld [vmem:[#allocation2] sm:$0xff]  ;;  %v339_v9 = vld [vmem:[#allocation2 + $0x10] sm:$0xff]  ;;  %v338_v12 = vld [vmem:[#allocation2 + $0x8] sm:$0xff] }
  0x10   :  { %v341_v10 = vld [vmem:[#allocation2 + $0x20] sm:$0xff]  ;;  %v343_v11 = vld [vmem:[#allocation2 + $0x30] sm:$0xff]  ;;  %v340_v13 = vld [vmem:[#allocation2 + $0x18] sm:$0xff] }
  0x11   :  { %173 = vmatpush.bf16.msra.mxu0 %v351_v1  ;;  %403 = vmatpush.bf16.msra.mxu1 %v351_v1  ;;  %v342_v14 = vld [vmem:[#allocation2 + $0x28] sm:$0xff]  ;;  %v344_v15 = vld [vmem:[#allocation2 + $0x38] sm:$0xff] }
  0x12   :  { %404 = vmatpush.bf16.msra.mxu2 %v351_v1  ;;  %405 = vmatpush.bf16.msra.mxu3 %v351_v1 }
  0x15   :  { %174 = vmatpush.bf16.msra.mxu0 %v350_v2  ;;  %406 = vmatpush.bf16.msra.mxu1 %v350_v2 }
  0x16   :  { %407 = vmatpush.bf16.msra.mxu2 %v350_v2  ;;  %408 = vmatpush.bf16.msra.mxu3 %v350_v2 }
  0x19   :  { %175 = vmatpush.bf16.msra.mxu0 %v349_v3  ;;  %409 = vmatpush.bf16.msra.mxu1 %v349_v3 }
  0x1a   :  { %410 = vmatpush.bf16.msra.mxu2 %v349_v3  ;;  %411 = vmatpush.bf16.msra.mxu3 %v349_v3 }
  0x1d   :  { %176 = vmatpush.bf16.msra.mxu0 %v348_v4  ;;  %412 = vmatpush.bf16.msra.mxu1 %v348_v4 }
  0x1e   :  { %413 = vmatpush.bf16.msra.mxu2 %v348_v4  ;;  %414 = vmatpush.bf16.msra.mxu3 %v348_v4 }
  0x21   :  { %177 = vmatpush.bf16.msra.mxu0 %v347_v5  ;;  %415 = vmatpush.bf16.msra.mxu1 %v347_v5 }
  0x22   :  { %416 = vmatpush.bf16.msra.mxu2 %v347_v5  ;;  %417 = vmatpush.bf16.msra.mxu3 %v347_v5 }
  0x25   :  { %178 = vmatpush.bf16.msra.mxu0 %v346_v6  ;;  %418 = vmatpush.bf16.msra.mxu1 %v346_v6 }
  0x26   :  { %419 = vmatpush.bf16.msra.mxu2 %v346_v6  ;;  %420 = vmatpush.bf16.msra.mxu3 %v346_v6 }
  0x29   :  { %179 = vmatpush.bf16.msra.mxu0 %v345_v7  ;;  %421 = vmatpush.bf16.msra.mxu1 %v345_v7 }
  0x2a   :  { %422 = vmatpush.bf16.msra.mxu2 %v345_v7  ;;  %423 = vmatpush.bf16.msra.mxu3 %v345_v7 }
  0x2c   :  { %180 = vmatmul.bf16.vlgmr.msra.gmra.mxu0 %v337_v8  ;;  %190 = vmatmul.bf16.vlgmr.msra.gmra.mxu1 %v339_v9 }
  0x2d   :  { %200 = vmatmul.bf16.vlgmr.msra.gmra.mxu2 %v341_v10  ;;  %210 = vmatmul.bf16.vlgmr.msra.gmra.mxu3 %v343_v11 }
  0x3c   :  { %185 = vmatmul.bf16.gmra.mxu0 %v338_v12  ;;  %195 = vmatmul.bf16.gmra.mxu1 %v340_v13 }
  0x3d   :  { %205 = vmatmul.bf16.gmra.mxu2 %v342_v14  ;;  %215 = vmatmul.bf16.gmra.mxu3 %v344_v15 }
  0xa9   :  { %v181_v16 = vpop.f32.mrf.mxu0  ;;  %v191_v17 = vpop.f32.mrf.mxu1 }
  0xb0   :  { %v201_v18 = vpop.f32.mrf.mxu2  ;;  %v211_v19 = vpop.f32.mrf.mxu3 }
  0xb1   :  { %v183_v20 = vpop.f32.mrf.mxu0  ;;  %v193_v21 = vpop.f32.mrf.mxu1 }
  0xb2   :  { %v356_v22 = vpack.c.bf16 %v183_v20, %v181_v16  ;;  %v366_v23 = vpack.c.bf16 %v193_v21, %v191_v17 }
  0xb4   :  { %357 = vst [vmem:[#allocation7] sm:$0xff] %v356_v22  }
  0xb5   :  { %394 = vst [vmem:[#allocation7 + $0x10] sm:$0xff] %v366_v23  }
  0xb8   :  { %v203_v24 = vpop.f32.mrf.mxu2  ;;  %v213_v25 = vpop.f32.mrf.mxu3 }
  0xb9   :  { %v376_v26 = vpack.c.bf16 %v203_v24, %v201_v18  ;;  %v386_v27 = vpack.c.bf16 %v213_v25, %v211_v19  ;;  %v186_v28 = vpop.f32.mrf.mxu0  ;;  %v196_v29 = vpop.f32.mrf.mxu1 }
  0xbb   :  { %396 = vst [vmem:[#allocation7 + $0x20] sm:$0xff] %v376_v26  }
  0xbc   :  { %398 = vst [vmem:[#allocation7 + $0x30] sm:$0xff] %v386_v27  }
  0xc0   :  { %v206_v30 = vpop.f32.mrf.mxu2  ;;  %v216_v31 = vpop.f32.mrf.mxu3 }
  0xc1   :  { %v188_v32 = vpop.f32.mrf.mxu0  ;;  %v198_v33 = vpop.f32.mrf.mxu1 }
  0xc2   :  { %v361_v34 = vpack.c.bf16 %v188_v32, %v186_v28  ;;  %v371_v35 = vpack.c.bf16 %v198_v33, %v196_v29 }
  0xc4   :  { %393 = vst [vmem:[#allocation7 + $0x8] sm:$0xff] %v361_v34  }
  0xc5   :  { %395 = vst [vmem:[#allocation7 + $0x18] sm:$0xff] %v371_v35  }
  0xc8   :  { %v208_v36 = vpop.f32.mrf.mxu2  ;;  %v218_v37 = vpop.f32.mrf.mxu3 }
  0xc9   :  { %v381_v38 = vpack.c.bf16 %v208_v36, %v206_v30  ;;  %v391_v39 = vpack.c.bf16 %v218_v37, %v216_v31 }
  0xcb   :  { %397 = vst [vmem:[#allocation7 + $0x28] sm:$0xff] %v381_v38  }
  0xcc   :  { %399 = vst [vmem:[#allocation7 + $0x38] sm:$0xff] %v391_v39  }
  0xcd   :  { %265 = dma.vmem_to_hbm [thread:$0]  %s258_s1, 1024, %s260_s23, [#allocation4], %s508_s17, %s508_s17, %s509_s18  }
  0xce   :  { %505 = dma.done.wait [#allocation4], 1024  }
  0xcf   :  { %506 = vsyncadd [#allocation4], 4294966272 }
  0xd0   :  { %270 = vsyncpa [#allocation3], 1 }
  0xd1   :  { %271 = vsyncpa [#allocation6], 1 }
  0xd2   :  { %272 = vsyncpa [#allocation4], 1 }

</bundles_post_ra>
